<compile_context>
chip_gen: v7x
topology: tpu7x:2x2x1
jax: 0.10.0
libtpu: 0.0.40
codegen_flags: <defaults>
</compile_context>

<pallas_src>
import jax
import jax.numpy as jnp
from jax.experimental import pallas as pl
from jax.experimental.pallas import tpu as pltpu

POUT = 64
DOUT = 64
FIN = POUT + DOUT   # 128
H1 = 1024
H2 = 256

_LANE = 128


def dta_kernel(xc_ref, w1_ref, b1_ref, w2_ref, b2_ref, w3_ref, out_ref):
    # In-kernel bf16 cast of the (TB, 128) f32 jointrep tile: VALU work hidden
    # under MXU slack; avoids a separate un-hidden XLA cast pass in the wrapper.
    xc = xc_ref[...].astype(jnp.bfloat16)

    # fc1 + ReLU   (dropout == identity at inference)
    h1 = jnp.dot(xc, w1_ref[...], preferred_element_type=jnp.float32) + b1_ref[...]
    h1 = jnp.maximum(h1, 0.0)

    # fc2 + ReLU
    h2 = jnp.dot(h1.astype(jnp.bfloat16), w2_ref[...],
                 preferred_element_type=jnp.float32) + b2_ref[...]
    h2 = jnp.maximum(h2, 0.0)

    # final 256 -> 1: VPU multiply + lane reduce (avoids an N=1 MXU push).
    # The bias b3 is added in the wrapper.
    w3_row = w3_ref[...].astype(jnp.float32)                     # (1, 256)
    out_ref[...] = jnp.sum(h2 * w3_row, axis=-1, keepdims=True)  # (TB, 1) f32


def _round_up(x, m):
    return ((x + m - 1) // m) * m


def _pick_tb(B, cap=2048):
    """Batch tile selection.

    * tiny batches (B <= 128): single tile, multiple of 16 (bf16 sublane pack);
    * larger batches: multiple of 128, sized ~ceil(B/2) so there are always
      >= 2 tiles (both v7x TensorCores engaged via the "parallel" grid axis);
    * capped (default 2048) so live VMEM (~20 MiB: h1 f32 8 MiB + h1 bf16
      4 MiB + h2 2 MiB + 2x xc f32 2 MiB + weights <1 MiB) stays inside the
      32 MiB scoped default everywhere, well under v7x's 64 MiB physical VMEM.
    """
    if B <= _LANE:
        return max(16, _round_up(B, 16))
    return min(cap, _round_up((B + 1) // 2, _LANE))


def dta_transfer_forward(xd, xp, params, tb_cap=2048):
    """Returns (out.view(-1), jointrep, xd, xp) matching the torch module."""
    w1, b1, w2, b2, w3, b3 = params
    B = xd.shape[0]

    # jointrep / passthroughs come straight from the wrapper (no kernel I/O);
    # it is also the kernel's (f32) activation input -- no extra cast/pad pass.
    xc = jnp.concatenate([xd, xp], axis=1).astype(jnp.float32)   # (B, 128)

    tb = _pick_tb(B, cap=tb_cap)
    if B < tb:
        # Tiny-batch path only: keep block dims <= array dims (trivial copy).
        xc_in = jnp.pad(xc, ((0, tb - B), (0, 0)))
    else:
        # Large batch: ragged last input tile (unspecified rows >= B are
        # confined to output rows >= B, which are discarded below).
        xc_in = xc
    b_in = xc_in.shape[0]
    n_tiles = pl.cdiv(b_in, tb)
    b_out = n_tiles * tb           # padded output => full, unmasked writebacks

    rows = b_out
    flops = 2 * rows * (FIN * H1 + H1 * H2 + H2)
    bytes_accessed = (xc_in.size * 4 + w1.size * 2 + w2.size * 2 + w3.size * 2
                      + b1.size * 4 + b2.size * 4 + rows * 4)

    out = pl.pallas_call(
        dta_kernel,
        out_shape=jax.ShapeDtypeStruct((b_out, 1), jnp.float32),
        grid=(n_tiles,),
        in_specs=[
            pl.BlockSpec((tb, FIN), lambda i: (i, 0)),    # xc tile (pipelined)
            pl.BlockSpec((FIN, H1), lambda i: (0, 0)),    # w1 (VMEM-resident)
            pl.BlockSpec((1, H1), lambda i: (0, 0)),      # b1
            pl.BlockSpec((H1, H2), lambda i: (0, 0)),     # w2
            pl.BlockSpec((1, H2), lambda i: (0, 0)),      # b2
            pl.BlockSpec((1, H2), lambda i: (0, 0)),      # w3 as a row
        ],
        out_specs=pl.BlockSpec((tb, 1), lambda i: (i, 0)),
        compiler_params=pltpu.CompilerParams(
            dimension_semantics=("parallel",)),
        cost_estimate=pl.CostEstimate(
            flops=flops, transcendentals=0, bytes_accessed=bytes_accessed),
    )(xc_in, w1, b1, w2, b2, w3)

    out_flat = out[:B, 0] + b3.reshape(())
    return out_flat, xc, xd, xp


def init_params(key):
    # Deterministic synthetic init (nn.Linear-style uniform fan-in scaling).
    # Weights stored [in, out] in bf16, biases in f32, w3 as a (1, 256) row.
    ks = jax.random.split(key, 6)

    def lin(kw, kb, fan_in, fan_out):
        bound = 1.0 / jnp.sqrt(fan_in)
        w = jax.random.uniform(kw, (fan_in, fan_out), jnp.float32, -bound, bound)
        b = jax.random.uniform(kb, (1, fan_out), jnp.float32, -bound, bound)
        return w, b

    w1, b1 = lin(ks[0], ks[1], FIN, H1)
    w2, b2 = lin(ks[2], ks[3], H1, H2)
    w3, b3 = lin(ks[4], ks[5], H2, 1)
    w3_row = w3.reshape(1, H2)           # (1, 256) row for the VPU final layer
    b3 = b3.reshape(1, 1)
    return (w1.astype(jnp.bfloat16), b1,
            w2.astype(jnp.bfloat16), b2,
            w3_row.astype(jnp.bfloat16), b3)


def reference_forward(xd, xp, params):
    # Pure-JAX reference with identical bf16-matmul / f32-accumulate numerics.
    w1, b1, w2, b2, w3, b3 = params
    xc = jnp.concatenate([xd, xp], axis=1)
    h1 = jnp.maximum(
        jnp.dot(xc.astype(jnp.bfloat16), w1,
                preferred_element_type=jnp.float32) + b1, 0.0)
    h2 = jnp.maximum(
        jnp.dot(h1.astype(jnp.bfloat16), w2,
                preferred_element_type=jnp.float32) + b2, 0.0)
    out = jnp.sum(h2 * w3.astype(jnp.float32), axis=-1, keepdims=True) + b3
    return out.reshape(-1), xc, xd, xp


if __name__ == "__main__":
    key = jax.random.PRNGKey(0)
    kp, kd, kparam = jax.random.split(key, 3)

    B = 8
    xd = jax.random.normal(kd, (B, DOUT), jnp.float32)   # pre-encoded drug features
    xp = jax.random.normal(kp, (B, POUT), jnp.float32)   # pre-encoded protein features
    params = init_params(kparam)

    out, joint, xd_o, xp_o = dta_transfer_forward(xd, xp, params)
    jax.block_until_ready((out, joint, xd_o, xp_o))

    r_out, r_joint, r_xd, r_xp = reference_forward(xd, xp, params)
    assert out.shape == (B,)
    assert joint.shape == (B, DOUT + POUT)
    assert jnp.allclose(out, r_out, atol=2e-3, rtol=2e-3)
    assert jnp.allclose(joint, r_joint, atol=1e-6)
    assert jnp.allclose(xd_o, r_xd) and jnp.allclose(xp_o, r_xp)

    # Exercise a larger, ragged batch (multi-tile path, both v7x cores) too.
    B2 = 1000
    kd2, kp2 = jax.random.split(jax.random.PRNGKey(1))
    xd2 = jax.random.normal(kd2, (B2, DOUT), jnp.float32)
    xp2 = jax.random.normal(kp2, (B2, POUT), jnp.float32)
    out2, joint2, _, _ = dta_transfer_forward(xd2, xp2, params)
    jax.block_until_ready((out2, joint2))
    r_out2, r_joint2, _, _ = reference_forward(xd2, xp2, params)
    assert out2.shape == (B2,)
    assert jnp.allclose(out2, r_out2, atol=2e-3, rtol=2e-3)
    assert jnp.allclose(joint2, r_joint2, atol=1e-6)

    print("KERNEL_OK")
</pallas_src>

<mosaic_0001>
module attributes {stable_mosaic.version = 11 : i64} {
  func.func @dta_kernel(%arg0: i32, %arg1: memref<16x128xf32, #tpu.memory_space<vmem>>, %arg2: memref<128x1024xbf16, #tpu.memory_space<vmem>>, %arg3: memref<1x1024xf32, #tpu.memory_space<vmem>>, %arg4: memref<1024x256xbf16, #tpu.memory_space<vmem>>, %arg5: memref<1x256xf32, #tpu.memory_space<vmem>>, %arg6: memref<1x256xbf16, #tpu.memory_space<vmem>>, %arg7: memref<16x1xf32, #tpu.memory_space<vmem>>) attributes {dimension_semantics = [#tpu.dimension_semantics<parallel>], iteration_bounds = array<i64: 1>, scalar_prefetch = 0 : i64, scratch_operands = 0 : i64, tpu.core_type = #tpu.core_type<tc>, window_params = [{transform_indices = @transform_0, window_bounds = array<i64: 16, 128>}, {pipeline_mode = #tpu.pipeline_mode<synchronous>, transform_indices = @transform_1, window_bounds = array<i64: 128, 1024>}, {pipeline_mode = #tpu.pipeline_mode<synchronous>, transform_indices = @transform_2, window_bounds = array<i64: 1, 1024>}, {pipeline_mode = #tpu.pipeline_mode<synchronous>, transform_indices = @transform_3, window_bounds = array<i64: 1024, 256>}, {pipeline_mode = #tpu.pipeline_mode<synchronous>, transform_indices = @transform_4, window_bounds = array<i64: 1, 256>}, {pipeline_mode = #tpu.pipeline_mode<synchronous>, transform_indices = @transform_5, window_bounds = array<i64: 1, 256>}, {transform_indices = @transform_6, window_bounds = array<i64: 16, 1>}]} {
    %c0 = arith.constant 0 : index
    %c0_0 = arith.constant 0 : index
    %0 = vector.load %arg1[%c0, %c0_0] : memref<16x128xf32, #tpu.memory_space<vmem>>, vector<16x128xf32>
    %1 = arith.truncf %0 : vector<16x128xf32> to vector<16x128xbf16>
    %c0_1 = arith.constant 0 : index
    %c0_2 = arith.constant 0 : index
    %2 = vector.load %arg2[%c0_1, %c0_2] : memref<128x1024xbf16, #tpu.memory_space<vmem>>, vector<128x1024xbf16>
    %cst = arith.constant dense<0.000000e+00> : vector<16x1024xf32>
    %3 = tpu.matmul %1, %2, %cst {dimension_numbers = #tpu.dot_dimension_numbers<[1], [0], [0], [1], [0, 0, 1, 1], [], []>} : vector<16x128xbf16>, vector<128x1024xbf16>, vector<16x1024xf32> -> vector<16x1024xf32>
    %c0_3 = arith.constant 0 : index
    %c0_4 = arith.constant 0 : index
    %4 = vector.load %arg3[%c0_3, %c0_4] : memref<1x1024xf32, #tpu.memory_space<vmem>>, vector<1x1024xf32>
    %5 = vector.broadcast %4 : vector<1x1024xf32> to vector<16x1024xf32>
    %6 = arith.addf %3, %5 : vector<16x1024xf32>
    %cst_5 = arith.constant 0.000000e+00 : f32
    %7 = vector.broadcast %cst_5 : f32 to vector<16x1024xf32>
    %8 = arith.maximumf %6, %7 : vector<16x1024xf32>
    %9 = arith.truncf %8 : vector<16x1024xf32> to vector<16x1024xbf16>
    %c0_6 = arith.constant 0 : index
    %c0_7 = arith.constant 0 : index
    %10 = vector.load %arg4[%c0_6, %c0_7] : memref<1024x256xbf16, #tpu.memory_space<vmem>>, vector<1024x256xbf16>
    %cst_8 = arith.constant dense<0.000000e+00> : vector<16x256xf32>
    %11 = tpu.matmul %9, %10, %cst_8 {dimension_numbers = #tpu.dot_dimension_numbers<[1], [0], [0], [1], [0, 0, 1, 1], [], []>} : vector<16x1024xbf16>, vector<1024x256xbf16>, vector<16x256xf32> -> vector<16x256xf32>
    %c0_9 = arith.constant 0 : index
    %c0_10 = arith.constant 0 : index
    %12 = vector.load %arg5[%c0_9, %c0_10] : memref<1x256xf32, #tpu.memory_space<vmem>>, vector<1x256xf32>
    %13 = vector.broadcast %12 : vector<1x256xf32> to vector<16x256xf32>
    %14 = arith.addf %11, %13 : vector<16x256xf32>
    %cst_11 = arith.constant 0.000000e+00 : f32
    %15 = vector.broadcast %cst_11 : f32 to vector<16x256xf32>
    %16 = arith.maximumf %14, %15 : vector<16x256xf32>
    %c0_12 = arith.constant 0 : index
    %c0_13 = arith.constant 0 : index
    %17 = vector.load %arg6[%c0_12, %c0_13] : memref<1x256xbf16, #tpu.memory_space<vmem>>, vector<1x256xbf16>
    %18 = arith.extf %17 : vector<1x256xbf16> to vector<1x256xf32>
    %19 = vector.broadcast %18 : vector<1x256xf32> to vector<16x256xf32>
    %20 = arith.mulf %16, %19 : vector<16x256xf32>
    %cst_14 = arith.constant dense<0.000000e+00> : vector<16xf32>
    %21 = vector.multi_reduction <add>, %20, %cst_14 [1] : vector<16x256xf32> to vector<16xf32>
    %22 = vector.shape_cast %21 : vector<16xf32> to vector<16x1xf32>
    %c0_15 = arith.constant 0 : index
    %c0_16 = arith.constant 0 : index
    %23 = vector.load %arg7[%c0_15, %c0_16] : memref<16x1xf32, #tpu.memory_space<vmem>>, vector<16x1xf32>
    tpu.vector_store %arg7[%c0_15, %c0_16], %22 {strides = array<i32>} : memref<16x1xf32, #tpu.memory_space<vmem>>, vector<16x1xf32>,
    return
  }
  func.func @transform_0(%arg0: i32) -> (i32, i32) {
    %c0_i32 = arith.constant 0 : i32
    %c0_i32_0 = arith.constant 0 : i32
    return %arg0, %c0_i32 : i32, i32
  }
  func.func @transform_1(%arg0: i32) -> (i32, i32) {
    %c0_i32 = arith.constant 0 : i32
    %c0_i32_0 = arith.constant 0 : i32
    %c0_i32_1 = arith.constant 0 : i32
    return %c0_i32, %c0_i32_0 : i32, i32
  }
  func.func @transform_2(%arg0: i32) -> (i32, i32) {
    %c0_i32 = arith.constant 0 : i32
    %c0_i32_0 = arith.constant 0 : i32
    %c0_i32_1 = arith.constant 0 : i32
    return %c0_i32, %c0_i32_0 : i32, i32
  }
  func.func @transform_3(%arg0: i32) -> (i32, i32) {
    %c0_i32 = arith.constant 0 : i32
    %c0_i32_0 = arith.constant 0 : i32
    %c0_i32_1 = arith.constant 0 : i32
    return %c0_i32, %c0_i32_0 : i32, i32
  }
  func.func @transform_4(%arg0: i32) -> (i32, i32) {
    %c0_i32 = arith.constant 0 : i32
    %c0_i32_0 = arith.constant 0 : i32
    %c0_i32_1 = arith.constant 0 : i32
    return %c0_i32, %c0_i32_0 : i32, i32
  }
  func.func @transform_5(%arg0: i32) -> (i32, i32) {
    %c0_i32 = arith.constant 0 : i32
    %c0_i32_0 = arith.constant 0 : i32
    %c0_i32_1 = arith.constant 0 : i32
    return %c0_i32, %c0_i32_0 : i32, i32
  }
  func.func @transform_6(%arg0: i32) -> (i32, i32) {
    %c0_i32 = arith.constant 0 : i32
    %c0_i32_0 = arith.constant 0 : i32
    return %arg0, %c0_i32 : i32, i32
  }
}

</mosaic_0001>

<bundles_post_ra>
// kernel: tpu_custom_call.1
= control target key start
LH: loop header
LB: loop body
LE: loop exit
PB: predicated region body
PF: predicated region fallthrough
CT: control target
= control target key end

     0   :  { %11 = vsyncpa [#allocation3], 0  ;;  %s2370_s0 = inlined_call_operand.hbm [shape: f32[16,128], index: 0, kind: input, shape index: {}]   ;;  %s2371_s1 = inlined_call_operand.hbm [shape: bf16[128,1024], index: 1, kind: input, shape index: {}]   ;;  %s2372_s2 = inlined_call_operand.hbm [shape: f32[1,1024], index: 2, kind: input, shape index: {}]   ;;  %s2373_s3 = inlined_call_operand.hbm [shape: bf16[1024,256], index: 3, kind: input, shape index: {}]   ;;  %s2374_s4 = inlined_call_operand.vmem [shape: f32[1,256], index: 4, kind: input, shape index: {}]   ;;  %s2375_s5 = inlined_call_operand.vmem [shape: bf16[1,256], index: 5, kind: input, shape index: {}]   ;;  %s2376_s6 = inlined_call_operand.vmem [shape: f32[16,1], index: 6, kind: output, shape index: {}]  }
   0x1   :  { %12 = vsyncpa [#allocation5], 0 }
   0x2   :  { %13 = vsyncpa [#allocation8], 0  ;;  %s2202_s21 = smov [#allocation4]   ;;  %s2108_s25 = scalar_lea.hbm %s2371_s1, 8192 }
   0x3   :  { %s31_s22 = sshll.u32 %s2202_s21, 4  ;;  %p2109_p0 = scmp.ne.s32.totalorder %s2371_s1, %s2108_s25  ;;  %s32_s22 = int_to_ptr.vmem [resolvable:$true] %s31_s22 }
   0x4   :  { %p2112_p1 = scmp.lt.u32.totalorder %s2108_s25, %s2371_s1 }
   0x6   :  { %p2114_p2 = pnand %p2112_p1, %p2109_p0 }
   0x8   :  { %2117 = shalt.err (!%p2114_p2)
}
   0x9   :  { %s2118_s30 = scalar_lea.vmem %s32_s22, 8192  ;;  %p2123_p4 = scmp.lt.s32.totalorder %s32_s22, %s32_s22 }
   0xa   :  { %p2119_p3 = scmp.ne.s32.totalorder %s32_s22, %s2118_s30  ;;  %p2124_p5 = scmp.lt.s32.totalorder %s2118_s30, %s2118_s30 }
   0xc   :  { %p2125_p6 = por %p2124_p5, %p2123_p4 }
   0xe   :  { %p2126_p7 = pnand %p2125_p6, %p2119_p3 }
  0x10   :  { %2129 = shalt.err (!%p2126_p7)
}
  0x11   :  { %s2203_s7 = smov 512   ;;  %s2204_s8 = smov 32  }
  0x12   :  { %37 = dma.hbm_to_vmem [thread:$0]  %s2371_s1, 8192, %s32_s22, [#allocation5], %s2203_s7, %s2203_s7, %s2204_s8  }
  0x13   :  { %s2205_s11 = smov [#allocation2]   ;;  %s2130_s15 = scalar_lea.hbm %s2370_s0, 256 }
  0x14   :  { %s19_s12 = sshll.u32 %s2205_s11, 4  ;;  %p2131_p8 = scmp.ne.s32.totalorder %s2370_s0, %s2130_s15  ;;  %s20_s12 = int_to_ptr.vmem [resolvable:$true] %s19_s12 }
  0x15   :  { %p2134_p9 = scmp.lt.u32.totalorder %s2130_s15, %s2370_s0 }
  0x17   :  { %p2136_p10 = pnand %p2134_p9, %p2131_p8 }
  0x19   :  { %2139 = shalt.err (!%p2136_p10)
}
  0x1a   :  { %s2140_s20 = scalar_lea.vmem %s20_s12, 256  ;;  %p2145_p12 = scmp.lt.s32.totalorder %s20_s12, %s20_s12 }
  0x1b   :  { %p2141_p11 = scmp.ne.s32.totalorder %s20_s12, %s2140_s20  ;;  %p2146_p13 = scmp.lt.s32.totalorder %s2140_s20, %s2140_s20 }
  0x1d   :  { %p2147_p0 = por %p2146_p13, %p2145_p12 }
  0x1f   :  { %p2148_p1 = pnand %p2147_p0, %p2141_p11 }
  0x21   :  { %2151 = shalt.err (!%p2148_p1)
}
  0x22   :  { %s2206_s1 = smov 128   ;;  %s2207_s21 = smov 8  }
  0x23   :  { %25 = dma.hbm_to_vmem [thread:$0]  %s2370_s0, 256, %s20_s12, [#allocation3], %s2206_s1, %s2206_s1, %s2207_s21  }
  0x24   :  { %s2208_s24 = smov [#allocation6]   ;;  %s2209_s26 = smov [#allocation7]  }
  0x25   :  { %s44_s25 = sshll.u32 %s2208_s24, 4  ;;  %s53_s27 = sshll.u32 %s2209_s26, 4  ;;  %s45_s25 = int_to_ptr.vmem [resolvable:$true] %s44_s25  ;;  %s2273_s27 = int_to_ptr.vmem [resolvable:$true] %s53_s27 }
  0x26   :  { %s2152_s30 = scalar_lea.hbm %s2372_s2, 128 }
  0x27   :  { %p2153_p2 = scmp.ne.s32.totalorder %s2372_s2, %s2152_s30  ;;  %p2156_p3 = scmp.lt.u32.totalorder %s2152_s30, %s2372_s2 }
  0x29   :  { %p2158_p4 = pnand %p2156_p3, %p2153_p2 }
  0x2b   :  { %2161 = shalt.err (!%p2158_p4)
}
  0x2c   :  { %s2162_s0 = scalar_lea.vmem %s45_s25, 128  ;;  %p2167_p6 = scmp.lt.s32.totalorder %s45_s25, %s45_s25 }
  0x2d   :  { %p2163_p5 = scmp.ne.s32.totalorder %s45_s25, %s2162_s0  ;;  %p2168_p7 = scmp.lt.s32.totalorder %s2162_s0, %s2162_s0 }
  0x2f   :  { %p2169_p8 = por %p2168_p7, %p2167_p6 }
  0x31   :  { %p2170_p9 = pnand %p2169_p8, %p2163_p5 }
  0x33   :  { %2173 = shalt.err (!%p2170_p9)
}
  0x34   :  { %47 = dma.hbm_to_vmem [thread:$0]  %s2372_s2, 128, %s45_s25, [#allocation5]  }
  0x35   :  { %s2174_s15 = scalar_lea.hbm %s2373_s3, 16384 }
  0x36   :  { %p2175_p10 = scmp.ne.s32.totalorder %s2373_s3, %s2174_s15  ;;  %p2178_p11 = scmp.lt.u32.totalorder %s2174_s15, %s2373_s3 }
  0x38   :  { %p2180_p12 = pnand %p2178_p11, %p2175_p10 }
  0x3a   :  { %2183 = shalt.err (!%p2180_p12)
}
  0x3b   :  { %s2184_s20 = scalar_lea.vmem %s2273_s27, 16384  ;;  %p2189_p0 = scmp.lt.s32.totalorder %s2273_s27, %s2273_s27 }
  0x3c   :  { %p2185_p13 = scmp.ne.s32.totalorder %s2273_s27, %s2184_s20  ;;  %p2190_p1 = scmp.lt.s32.totalorder %s2184_s20, %s2184_s20 }
  0x3e   :  { %p2191_p2 = por %p2190_p1, %p2189_p0 }
  0x40   :  { %p2192_p3 = pnand %p2191_p2, %p2185_p13 }
  0x42   :  { %2195 = shalt.err (!%p2192_p3)
}
  0x43   :  { %59 = dma.hbm_to_vmem [thread:$0]  %s2373_s3, 16384, %s2273_s27, [#allocation8], %s2206_s1, %s2206_s1, %s2207_s21  }
  0x44   :  { %2196 = dma.done.wait [#allocation3], 256  }
  0x45   :  { %2197 = vsyncadd [#allocation3], 4294967040 }
  0x46   :  { %2198 = dma.done.wait [#allocation5], 8320  }
  0x47   :  { %2199 = vsyncadd [#allocation5], 4294958976 }
  0x48   :  { %2200 = dma.done.wait [#allocation8], 16384  }
  0x49   :  { %2201 = vsyncadd [#allocation8], 4294950912  ;;  %v2210_v0 = vmov 0   ;;  %v80_v1 = vld [vmem:[#allocation4] sm:$0xff]  ;;  %v81_v18 = vld [vmem:[#allocation4 + $0x8] sm:$0xff]  ;;  %vm1689_vm0 = vcmask 7168  }
  0x4a   :  { %538 = vmatprep.mubr.bf16.mxu0 %v2210_v0  ;;  %581 = vmatprep.mubr.bf16.mxu1 %v2210_v0  ;;  %v84_v2 = vld [vmem:[#allocation4 + $0x20] sm:$0xff]  ;;  %v85_v19 = vld [vmem:[#allocation4 + $0x28] sm:$0xff]  ;;  %v82_v49 = vld [vmem:[#allocation4 + $0x10] sm:$0xff] }
  0x4b   :  { %v88_v3 = vld [vmem:[#allocation4 + $0x40] sm:$0xff]  ;;  %v1700_v4 = vcombine.high %v80_v1, %v84_v2  ;;  %v1699_v5 = vcombine.low %v80_v1, %v84_v2  ;;  %v1702_v21 = vcombine.high %v81_v18, %v85_v19  ;;  %v1701_v22 = vcombine.low %v81_v18, %v85_v19  ;;  %v89_v23 = vld [vmem:[#allocation4 + $0x48] sm:$0xff]  ;;  %v86_v54 = vld [vmem:[#allocation4 + $0x30] sm:$0xff] }
  0x4c   :  { %v92_v6 = vld [vmem:[#allocation4 + $0x60] sm:$0xff]  ;;  %v93_v24 = vld [vmem:[#allocation4 + $0x68] sm:$0xff]  ;;  %v77_v55 = vld [vmem:[#allocation2] sm:$0xff]  ;;  %v1704_v61 = vcombine.high %v82_v49, %v86_v54 }
  0x4d   :  { %v1708_v7 = vcombine.high %v88_v3, %v92_v6  ;;  %v96_v8 = vld [vmem:[#allocation4 + $0x80] sm:$0xff]  ;;  %506 = vmatprep.subr.bf16.mxu0 %v1700_v4  ;;  %v1707_v10 = vcombine.low %v88_v3, %v92_v6  ;;  %v1710_v26 = vcombine.high %v89_v23, %v93_v24  ;;  %v97_v27 = vld [vmem:[#allocation4 + $0x88] sm:$0xff]  ;;  %549 = vmatprep.subr.bf16.mxu1 %v1702_v21  ;;  %v78_v58 = vld [vmem:[#allocation2 + $0x8] sm:$0xff] }
  0x4e   :  { %v100_v9 = vld [vmem:[#allocation4 + $0xa0] sm:$0xff]  ;;  %507 = vmatpush1.bf16.msra.mxu0 %v1699_v5  ;;  %v101_v28 = vld [vmem:[#allocation4 + $0xa8] sm:$0xff]  ;;  %550 = vmatpush1.bf16.msra.mxu1 %v1701_v22  ;;  %v1709_v31 = vcombine.low %v89_v23, %v93_v24  ;;  %v90_v59 = vld [vmem:[#allocation4 + $0x50] sm:$0xff]  ;;  %v2309_v2 = vpack.c.bf16 %v78_v58, %v77_v55  ;;  %v1703_v4 = vcombine.low %v82_v49, %v86_v54 }
  0x4f   :  { %508 = vmatprep.subr.bf16.mxu0 %v1708_v7  ;;  %v1716_v11 = vcombine.high %v96_v8, %v100_v9  ;;  %v104_v12 = vld [vmem:[#allocation4 + $0xc0] sm:$0xff]  ;;  %v1715_v14 = vcombine.low %v96_v8, %v100_v9  ;;  %551 = vmatprep.subr.bf16.mxu1 %v1710_v26  ;;  %v1718_v33 = vcombine.high %v97_v27, %v101_v28  ;;  %v105_v35 = vld [vmem:[#allocation4 + $0xc8] sm:$0xff]  ;;  %v94_v62 = vld [vmem:[#allocation4 + $0x70] sm:$0xff] }
  0x50   :  { %v108_v13 = vld [vmem:[#allocation4 + $0xe0] sm:$0xff]  ;;  %v109_v36 = vld [vmem:[#allocation4 + $0xe8] sm:$0xff]  ;;  %v1717_v39 = vcombine.low %v97_v27, %v101_v28  ;;  %v98_v5 = vld [vmem:[#allocation4 + $0x90] sm:$0xff]  ;;  %v1712_v6 = vcombine.high %v90_v59, %v94_v62 }
  0x51   :  { %v1724_v15 = vcombine.high %v104_v12, %v108_v13  ;;  %v112_v16 = vld [vmem:[#allocation4 + $0x100] sm:$0xff]  ;;  %v1723_v20 = vcombine.low %v104_v12, %v108_v13  ;;  %v1726_v41 = vcombine.high %v105_v35, %v109_v36  ;;  %v113_v44 = vld [vmem:[#allocation4 + $0x108] sm:$0xff]  ;;  %v1725_v47 = vcombine.low %v105_v35, %v109_v36  ;;  %v106_v13 = vld [vmem:[#allocation4 + $0xd0] sm:$0xff] }
  0x52   :  { %509 = vmatpush1.bf16.msra.mxu0 %v1707_v10  ;;  %v116_v17 = vld [vmem:[#allocation4 + $0x120] sm:$0xff]  ;;  %552 = vmatpush1.bf16.msra.mxu1 %v1709_v31  ;;  %v117_v45 = vld [vmem:[#allocation4 + $0x128] sm:$0xff]  ;;  %v102_v10 = vld [vmem:[#allocation4 + $0xb0] sm:$0xff]  ;;  %v1711_v12 = vcombine.low %v90_v59, %v94_v62 }
  0x53   :  { %510 = vmatprep.subr.bf16.mxu0 %v1716_v11  ;;  %v1732_v25 = vcombine.high %v112_v16, %v116_v17  ;;  %v120_v29 = vld [vmem:[#allocation4 + $0x140] sm:$0xff]  ;;  %v1731_v32 = vcombine.low %v112_v16, %v116_v17  ;;  %553 = vmatprep.subr.bf16.mxu1 %v1718_v33  ;;  %v1734_v50 = vcombine.high %v113_v44, %v117_v45  ;;  %v121_v52 = vld [vmem:[#allocation4 + $0x148] sm:$0xff]  ;;  %v83_v16 = vld [vmem:[#allocation4 + $0x18] sm:$0xff] }
  0x54   :  { %v124_v30 = vld [vmem:[#allocation4 + $0x160] sm:$0xff]  ;;  %v125_v53 = vld [vmem:[#allocation4 + $0x168] sm:$0xff]  ;;  %v1733_v56 = vcombine.low %v113_v44, %v117_v45  ;;  %v87_v17 = vld [vmem:[#allocation4 + $0x38] sm:$0xff] }
  0x55   :  { %v1740_v34 = vcombine.high %v120_v29, %v124_v30  ;;  %v128_v37 = vld [vmem:[#allocation4 + $0x180] sm:$0xff]  ;;  %v1739_v40 = vcombine.low %v120_v29, %v124_v30  ;;  %v1742_v60 = vcombine.high %v121_v52, %v125_v53  ;;  %v129_v63 = vld [vmem:[#allocation4 + $0x188] sm:$0xff]  ;;  %v1741_v3 = vcombine.low %v121_v52, %v125_v53  ;;  %v110_v18 = vld [vmem:[#allocation4 + $0xf0] sm:$0xff] }
  0x56   :  { %511 = vmatpush1.bf16.msra.mxu0 %v1715_v14  ;;  %v132_v38 = vld [vmem:[#allocation4 + $0x1a0] sm:$0xff]  ;;  %554 = vmatpush1.bf16.msra.mxu1 %v1717_v39  ;;  %v133_v1 = vld [vmem:[#allocation4 + $0x1a8] sm:$0xff]  ;;  %v114_v21 = vld [vmem:[#allocation4 + $0x110] sm:$0xff]  ;;  %v1706_v22 = vcombine.high %v83_v16, %v87_v17  ;;  %v1728_v23 = vcombine.high %v106_v13, %v110_v18  ;;  %v1705_v27 = vcombine.low %v83_v16, %v87_v17 }
  0x57   :  { %512 = vmatprep.subr.bf16.mxu0 %v1724_v15  ;;  %v1748_v42 = vcombine.high %v128_v37, %v132_v38  ;;  %v136_v43 = vld [vmem:[#allocation4 + $0x1c0] sm:$0xff]  ;;  %v1747_v48 = vcombine.low %v128_v37, %v132_v38  ;;  %555 = vmatprep.subr.bf16.mxu1 %v1726_v41  ;;  %v1750_v7 = vcombine.high %v129_v63, %v133_v1  ;;  %v137_v8 = vld [vmem:[#allocation4 + $0x1c8] sm:$0xff]  ;;  %v91_v24 = vld [vmem:[#allocation4 + $0x58] sm:$0xff] }
  0x58   :  { %v140_v46 = vld [vmem:[#allocation4 + $0x1e0] sm:$0xff]  ;;  %v141_v9 = vld [vmem:[#allocation4 + $0x1e8] sm:$0xff]  ;;  %v1749_v11 = vcombine.low %v129_v63, %v133_v1  ;;  %v1720_v15 = vcombine.high %v98_v5, %v102_v10  ;;  %v118_v26 = vld [vmem:[#allocation4 + $0x130] sm:$0xff]  ;;  %v1727_v28 = vcombine.low %v106_v13, %v110_v18 }
  0x59   :  { %v1756_v51 = vcombine.high %v136_v43, %v140_v46  ;;  %v1755_v57 = vcombine.low %v136_v43, %v140_v46  ;;  %v1758_v14 = vcombine.high %v137_v8, %v141_v9  ;;  %v1757_v19 = vcombine.low %v137_v8, %v141_v9  ;;  %v122_v29 = vld [vmem:[#allocation4 + $0x150] sm:$0xff]  ;;  %v103_v33 = vld [vmem:[#allocation4 + $0xb8] sm:$0xff] }
  0x5a   :  { %513 = vmatpush1.bf16.msra.mxu0 %v1723_v20  ;;  %556 = vmatpush1.bf16.msra.mxu1 %v1725_v47  ;;  %v1719_v20 = vcombine.low %v98_v5, %v102_v10  ;;  %v1736_v31 = vcombine.high %v114_v21, %v118_v26  ;;  %v1735_v36 = vcombine.low %v114_v21, %v118_v26  ;;  %v130_v37 = vld [vmem:[#allocation4 + $0x190] sm:$0xff]  ;;  %v111_v41 = vld [vmem:[#allocation4 + $0xf8] sm:$0xff] }
  0x5b   :  { %514 = vmatprep.subr.bf16.mxu0 %v1732_v25  ;;  %557 = vmatprep.subr.bf16.mxu1 %v1734_v50  ;;  %v95_v25 = vld [vmem:[#allocation4 + $0x78] sm:$0xff]  ;;  %v134_v38 = vld [vmem:[#allocation4 + $0x1b0] sm:$0xff] }
  0x5c   :  { %v1714_v30 = vcombine.high %v91_v24, %v95_v25  ;;  %v1713_v35 = vcombine.low %v91_v24, %v95_v25  ;;  %v115_v44 = vld [vmem:[#allocation4 + $0x118] sm:$0xff]  ;;  %v138_v47 = vld [vmem:[#allocation4 + $0x1d0] sm:$0xff]  ;;  %v1752_v49 = vcombine.high %v130_v37, %v134_v38  ;;  %v1751_v53 = vcombine.low %v130_v37, %v134_v38 }
  0x5d   :  { %v119_v45 = vld [vmem:[#allocation4 + $0x138] sm:$0xff]  ;;  %v1945_v59 = vld [vmem:[#allocation7 + $0x204] ss:$8 sps:$4 sm:$0xff]   ;;  %v1943_v62 = vld [vmem:[#allocation7 + $0x200] ss:$8 sps:$4 sm:$0xff]  }
  0x5e   :  { %515 = vmatpush1.bf16.msra.mxu0 %v1731_v32  ;;  %558 = vmatpush1.bf16.msra.mxu1 %v1733_v56  ;;  %v99_v32 = vld [vmem:[#allocation4 + $0x98] sm:$0xff]  ;;  %v1738_v54 = vcombine.high %v115_v44, %v119_v45  ;;  %v1737_v56 = vcombine.low %v115_v44, %v119_v45  ;;  %v1957_v8 = vld [vmem:[#allocation7 + $0x224] ss:$8 sps:$4 sm:$0xff]   ;;  %v1952_v38 = vld [vmem:[#allocation7 + $0xa0] ss:$8 sps:$4 sm:$0xff]  }
  0x5f   :  { %516 = vmatprep.subr.bf16.mxu0 %v1740_v34  ;;  %559 = vmatprep.subr.bf16.mxu1 %v1742_v60  ;;  %v126_v34 = vld [vmem:[#allocation4 + $0x170] sm:$0xff]  ;;  %v1722_v39 = vcombine.high %v99_v32, %v103_v33  ;;  %v1721_v43 = vcombine.low %v99_v32, %v103_v33  ;;  %v127_v52 = vld [vmem:[#allocation4 + $0x178] sm:$0xff] }
  0x60   :  { %v1743_v46 = vcombine.low %v122_v29, %v126_v34  ;;  %v135_v58 = vld [vmem:[#allocation4 + $0x1b8] sm:$0xff]  ;;  %v1918_v10 = vld [vmem:[#allocation7 + $0x4] ss:$8 sps:$4 sm:$0xff]   ;;  %v1964_v45 = vld [vmem:[#allocation7 + $0xc0] ss:$8 sps:$4 sm:$0xff]  }
  0x61   :  { %v139_v1 = vld [vmem:[#allocation4 + $0x1d8] sm:$0xff]  ;;  %v1969_v17 = vld [vmem:[#allocation7 + $0x244] ss:$8 sps:$4 sm:$0xff]  }
  0x62   :  { %517 = vmatpush1.bf16.msra.mxu0 %v1739_v40  ;;  %560 = vmatpush1.bf16.msra.mxu1 %v1741_v3  ;;  %v107_v40 = vld [vmem:[#allocation4 + $0xd8] sm:$0xff]  ;;  %v1930_v26 = vld [vmem:[#allocation7 + $0x44] ss:$8 sps:$4 sm:$0xff]  }
  0x63   :  { %518 = vmatprep.subr.bf16.mxu0 %v1748_v42  ;;  %561 = vmatprep.subr.bf16.mxu1 %v1750_v7  ;;  %v1744_v42 = vcombine.high %v122_v29, %v126_v34  ;;  %v1729_v50 = vcombine.low %v107_v40, %v111_v41  ;;  %v143_v3 = vld [vmem:[#allocation4 + $0x1f8] sm:$0xff]  ;;  %v1936_v29 = vld [vmem:[#allocation7 + $0x64] ss:$8 sps:$4 sm:$0xff]   ;;  %v1940_v34 = vld [vmem:[#allocation7 + $0x80] ss:$8 sps:$4 sm:$0xff]  }
  0x64   :  { %v1762_v9 = vcombine.high %v139_v1, %v143_v3  ;;  %v1963_v13 = vld [vmem:[#allocation7 + $0x234] ss:$8 sps:$4 sm:$0xff]   ;;  %v1961_v16 = vld [vmem:[#allocation7 + $0x230] ss:$8 sps:$4 sm:$0xff]   ;;  %v1942_v33 = vld [vmem:[#allocation7 + $0x84] ss:$8 sps:$4 sm:$0xff]  }
  0x65   :  { %v1919_v18 = vld [vmem:[#allocation7 + $0x10] ss:$8 sps:$4 sm:$0xff]   ;;  %v1975_v21 = vld [vmem:[#allocation7 + $0x254] ss:$8 sps:$4 sm:$0xff]   ;;  %v1954_v37 = vld [vmem:[#allocation7 + $0xa4] ss:$8 sps:$4 sm:$0xff]  }
  0x66   :  { %519 = vmatpush1.bf16.msra.mxu0 %v1747_v48  ;;  %562 = vmatpush1.bf16.msra.mxu1 %v1749_v11  ;;  %v142_v48 = vld [vmem:[#allocation4 + $0x1f0] sm:$0xff]  ;;  %v1973_v24 = vld [vmem:[#allocation7 + $0x250] ss:$8 sps:$4 sm:$0xff]   ;;  %v1987_v44 = vld [vmem:[#allocation7 + $0x274] ss:$8 sps:$4 sm:$0xff]  }
  0x67   :  { %520 = vmatprep.subr.bf16.mxu0 %v1756_v51  ;;  %563 = vmatprep.subr.bf16.mxu1 %v1758_v14  ;;  %v123_v51 = vld [vmem:[#allocation4 + $0x158] sm:$0xff]  ;;  %v1760_v55 = vcombine.high %v138_v47, %v142_v48  ;;  %v1759_v60 = vcombine.low %v138_v47, %v142_v48  ;;  %v1955_v11 = vld [vmem:[#allocation7 + $0x220] ss:$8 sps:$4 sm:$0xff]   ;;  %v1993_v48 = vld [vmem:[#allocation7 + $0x284] ss:$8 sps:$4 sm:$0xff]  }
  0x68   :  { %v1745_v63 = vcombine.low %v123_v51, %v127_v52  ;;  %v1916_v14 = vld [vmem:[#allocation7] ss:$8 sps:$4 sm:$0xff]   ;;  %v1925_v25 = vld [vmem:[#allocation7 + $0x30] ss:$8 sps:$4 sm:$0xff]   ;;  %v1972_v47 = vld [vmem:[#allocation7 + $0xd4] ss:$8 sps:$4 sm:$0xff]  }
  0x69   :  { %v1937_v32 = vld [vmem:[#allocation7 + $0x70] ss:$8 sps:$4 sm:$0xff]  }
  0x6a   :  { %521 = vmatpush1.bf16.msra.mxu0 %v1755_v57  ;;  %564 = vmatpush1.bf16.msra.mxu1 %v1757_v19  ;;  %v131_v57 = vld [vmem:[#allocation4 + $0x198] sm:$0xff]  ;;  %v1924_v19 = vld [vmem:[#allocation7 + $0x24] ss:$8 sps:$4 sm:$0xff]  }
  0x6b   :  { %592 = vmatprep.subr.bf16.mxu0 %v1704_v61  ;;  %635 = vmatprep.subr.bf16.mxu1 %v1706_v22  ;;  %v1746_v61 = vcombine.high %v123_v51, %v127_v52  ;;  %v1754_v5 = vcombine.high %v131_v57, %v135_v58  ;;  %v1753_v7 = vcombine.low %v131_v57, %v135_v58  ;;  %v1922_v22 = vld [vmem:[#allocation7 + $0x20] ss:$8 sps:$4 sm:$0xff]   ;;  %v1997_v52 = vld [vmem:[#allocation7 + $0x290] ss:$8 sps:$4 sm:$0xff]   ;;  %v2005_v57 = vld [vmem:[#allocation7 + $0x2a4] ss:$8 sps:$4 sm:$0xff]  }
  0x6c   :  { %v1976_v51 = vld [vmem:[#allocation7 + $0xe0] ss:$8 sps:$4 sm:$0xff]   ;;  %v1990_v58 = vld [vmem:[#allocation7 + $0x104] ss:$8 sps:$4 sm:$0xff]  }
  0x6d   :  { %539 = vmatmul.mubr.bf16.vlgmr.msra.gmra.mrb[0].mxu0 %v2309_v2  ;;  %582 = vmatmul.mubr.bf16.vlgmr.msra.gmra.mrb[0].mxu1 %v2309_v2 }
  0x6e   :  { %593 = vmatpush1.bf16.msra.mxu0 %v1703_v4  ;;  %624 = vmatprep.mubr.bf16.mxu0 %v2210_v0  ;;  %v1951_v4 = vld [vmem:[#allocation7 + $0x214] ss:$8 sps:$4 sm:$0xff]  }
  0x6f   :  { %594 = vmatprep.subr.bf16.mxu0 %v1712_v6  ;;  %636 = vmatpush1.bf16.msra.mxu1 %v1705_v27  ;;  %v1949_v6 = vld [vmem:[#allocation7 + $0x210] ss:$8 sps:$4 sm:$0xff]   ;;  %v1933_v27 = vld [vmem:[#allocation7 + $0x54] ss:$8 sps:$4 sm:$0xff]  }
  0x70   :  { %667 = vmatprep.mubr.bf16.mxu1 %v2210_v0  ;;  %637 = vmatprep.subr.bf16.mxu1 %v1714_v30  ;;  %v1730_v0 = vcombine.high %v107_v40, %v111_v41  ;;  %v1934_v30 = vld [vmem:[#allocation7 + $0x60] ss:$8 sps:$4 sm:$0xff]   ;;  %v1981_v40 = vld [vmem:[#allocation7 + $0x264] ss:$8 sps:$4 sm:$0xff]   ;;  %v1958_v41 = vld [vmem:[#allocation7 + $0xb0] ss:$8 sps:$4 sm:$0xff]  }
  0x72   :  { %595 = vmatpush1.bf16.msra.mxu0 %v1711_v12  ;;  %v1761_v12 = vcombine.low %v139_v1, %v143_v3  ;;  %v2023_v1 = vld [vmem:[#allocation7 + $0x2d4] ss:$8 sps:$4 sm:$0xff]   ;;  %v2029_v3 = vld [vmem:[#allocation7 + $0x2e4] ss:$8 sps:$4 sm:$0xff]  }
  0x73   :  { %596 = vmatprep.subr.bf16.mxu0 %v1720_v15  ;;  %638 = vmatpush1.bf16.msra.mxu1 %v1713_v35  ;;  %v1921_v15 = vld [vmem:[#allocation7 + $0x14] ss:$8 sps:$4 sm:$0xff]  }
  0x74   :  { %639 = vmatprep.subr.bf16.mxu1 %v1722_v39  ;;  %v1948_v35 = vld [vmem:[#allocation7 + $0x94] ss:$8 sps:$4 sm:$0xff]  }
  0x75   :  { %v1960_v39 = vld [vmem:[#allocation7 + $0xb4] ss:$8 sps:$4 sm:$0xff]  }
  0x76   :  { %597 = vmatpush1.bf16.msra.mxu0 %v1719_v20  ;;  %v1967_v20 = vld [vmem:[#allocation7 + $0x240] ss:$8 sps:$4 sm:$0xff]  }
  0x77   :  { %598 = vmatprep.subr.bf16.mxu0 %v1728_v23  ;;  %640 = vmatpush1.bf16.msra.mxu1 %v1721_v43  ;;  %v1927_v23 = vld [vmem:[#allocation7 + $0x34] ss:$8 sps:$4 sm:$0xff]   ;;  %v1966_v43 = vld [vmem:[#allocation7 + $0xc4] ss:$8 sps:$4 sm:$0xff]  }
  0x78   :  { %641 = vmatprep.subr.bf16.mxu1 %v1730_v0  ;;  %v1970_v0 = vld [vmem:[#allocation7 + $0xd0] ss:$8 sps:$4 sm:$0xff]  }
  0x7a   :  { %599 = vmatpush1.bf16.msra.mxu0 %v1727_v28  ;;  %v1931_v28 = vld [vmem:[#allocation7 + $0x50] ss:$8 sps:$4 sm:$0xff]  }
  0x7b   :  { %600 = vmatprep.subr.bf16.mxu0 %v1736_v31  ;;  %642 = vmatpush1.bf16.msra.mxu1 %v1729_v50  ;;  %v1939_v31 = vld [vmem:[#allocation7 + $0x74] ss:$8 sps:$4 sm:$0xff]   ;;  %v1978_v50 = vld [vmem:[#allocation7 + $0xe4] ss:$8 sps:$4 sm:$0xff]  }
  0x7c   :  { %643 = vmatprep.subr.bf16.mxu1 %v1738_v54  ;;  %v1984_v54 = vld [vmem:[#allocation7 + $0xf4] ss:$8 sps:$4 sm:$0xff]  }
  0x7e   :  { %601 = vmatpush1.bf16.msra.mxu0 %v1735_v36  ;;  %v1946_v36 = vld [vmem:[#allocation7 + $0x90] ss:$8 sps:$4 sm:$0xff]  }
  0x7f   :  { %602 = vmatprep.subr.bf16.mxu0 %v1744_v42  ;;  %644 = vmatpush1.bf16.msra.mxu1 %v1737_v56  ;;  %v1979_v42 = vld [vmem:[#allocation7 + $0x260] ss:$8 sps:$4 sm:$0xff]  }
  0x80   :  { %645 = vmatprep.subr.bf16.mxu1 %v1746_v61  ;;  %v2003_v56 = vld [vmem:[#allocation7 + $0x2a0] ss:$8 sps:$4 sm:$0xff]  }
  0x81   :  { %v2015_v61 = vld [vmem:[#allocation7 + $0x2c0] ss:$8 sps:$4 sm:$0xff]  }
  0x82   :  { %603 = vmatpush1.bf16.msra.mxu0 %v1743_v46  ;;  %v1985_v46 = vld [vmem:[#allocation7 + $0x270] ss:$8 sps:$4 sm:$0xff]  }
  0x83   :  { %604 = vmatprep.subr.bf16.mxu0 %v1752_v49  ;;  %646 = vmatpush1.bf16.msra.mxu1 %v1745_v63  ;;  %v1991_v49 = vld [vmem:[#allocation7 + $0x280] ss:$8 sps:$4 sm:$0xff]   ;;  %v2021_v63 = vld [vmem:[#allocation7 + $0x2d0] ss:$8 sps:$4 sm:$0xff]  }
  0x84   :  { %647 = vmatprep.subr.bf16.mxu1 %v1754_v5  ;;  %v2035_v5 = vld [vmem:[#allocation7 + $0x2f4] ss:$8 sps:$4 sm:$0xff]  }
  0x86   :  { %605 = vmatpush1.bf16.msra.mxu0 %v1751_v53  ;;  %v1999_v53 = vld [vmem:[#allocation7 + $0x294] ss:$8 sps:$4 sm:$0xff]  }
  0x87   :  { %606 = vmatprep.subr.bf16.mxu0 %v1760_v55  ;;  %648 = vmatpush1.bf16.msra.mxu1 %v1753_v7  ;;  %v1982_v55 = vld [vmem:[#allocation7 + $0xf0] ss:$8 sps:$4 sm:$0xff]   ;;  %v2041_v7 = vld [vmem:[#allocation7 + $0x304] ss:$8 sps:$4 sm:$0xff]  }
  0x88   :  { %649 = vmatprep.subr.bf16.mxu1 %v1762_v9 }
  0x8a   :  { %607 = vmatpush1.bf16.msra.mxu0 %v1759_v60  ;;  %v2011_v60 = vld [vmem:[#allocation7 + $0x2b4] ss:$8 sps:$4 sm:$0xff]  }
  0x8b   :  { %1568 = vmatprep.subr.bf16.mxu0 %v1945_v59  ;;  %650 = vmatpush1.bf16.msra.mxu1 %v1761_v12  ;;  %v2009_v59 = vld [vmem:[#allocation7 + $0x2b0] ss:$8 sps:$4 sm:$0xff]  }
  0x8c   :  { %1482 = vmatprep.subr.bf16.mxu1 %v1918_v10 }
  0x8d   :  { %625 = vmatmul.mubr.bf16.vlgmr.msra.gmra.mrb[4].mxu0 %v2309_v2 }
  0x8e   :  { %1569 = vmatpush1.bf16.msra.mxu0 %v1943_v62  ;;  %668 = vmatmul.mubr.bf16.vlgmr.msra.gmra.mrb[4].mxu1 %v2309_v2  ;;  %v1928_v2 = vld [vmem:[#allocation7 + $0x40] ss:$8 sps:$4 sm:$0xff]   ;;  %v2017_v62 = vld [vmem:[#allocation7 + $0x2c4] ss:$8 sps:$4 sm:$0xff]  }
  0x8f   :  { %1570 = vmatprep.subr.bf16.mxu0 %v1951_v4  ;;  %1483 = vmatpush1.bf16.msra.mxu1 %v1916_v14  ;;  %v2027_v4 = vld [vmem:[#allocation7 + $0x2e0] ss:$8 sps:$4 sm:$0xff]  }
  0x90   :  { %1484 = vmatprep.subr.bf16.mxu1 %v1921_v15 }
  0x92   :  { %1571 = vmatpush1.bf16.msra.mxu0 %v1949_v6  ;;  %v2033_v6 = vld [vmem:[#allocation7 + $0x2f0] ss:$8 sps:$4 sm:$0xff]  }
  0x93   :  { %1572 = vmatprep.subr.bf16.mxu0 %v1957_v8  ;;  %1485 = vmatpush1.bf16.msra.mxu1 %v1919_v18  ;;  %v146_v8 = vlaneseq }
  0x94   :  { %1486 = vmatprep.subr.bf16.mxu1 %v1924_v19 }
  0x95   :  { %v2317_v9 = vshrl.u32 %v146_v8, 7 }
  0x96   :  { %1573 = vmatpush1.bf16.msra.mxu0 %v1955_v11  ;;  %v2322_v11 = vld [vmem:[#allocation6] sm:$0xff] }
  0x97   :  { %1574 = vmatprep.subr.bf16.mxu0 %v1963_v13  ;;  %1487 = vmatpush1.bf16.msra.mxu1 %v1922_v22  ;;  %v2320_v10 = vsub.s32 0, %v2317_v9  ;;  %v152_v12 = vsub.s32 1, %v2317_v9 }
  0x98   :  { %1488 = vmatprep.subr.bf16.mxu1 %v1927_v23 }
  0x99   :  { %v149_v13 = vrot.slane %v2322_v11, %v2320_v10  ;;  %v153_v14 = vrot.slane %v2322_v11, %v152_v12 }
  0x9a   :  { %1575 = vmatpush1.bf16.msra.mxu0 %v1961_v16 }
  0x9b   :  { %1576 = vmatprep.subr.bf16.mxu0 %v1969_v17  ;;  %1489 = vmatpush1.bf16.msra.mxu1 %v1925_v25 }
  0x9c   :  { %1490 = vmatprep.subr.bf16.mxu1 %v1930_v26  ;;  %v160_v26 = vsub.s32 3, %v2317_v9 }
  0x9e   :  { %1577 = vmatpush1.bf16.msra.mxu0 %v1967_v20 }
  0x9f   :  { %1578 = vmatprep.subr.bf16.mxu0 %v1975_v21  ;;  %1491 = vmatpush1.bf16.msra.mxu1 %v1928_v2 }
  0xa0   :  { %1492 = vmatprep.subr.bf16.mxu1 %v1933_v27 }
  0xa2   :  { %1579 = vmatpush1.bf16.msra.mxu0 %v1973_v24  ;;  %v156_v24 = vsub.s32 2, %v2317_v9 }
  0xa3   :  { %1493 = vmatpush1.bf16.msra.mxu1 %v1931_v28  ;;  %1580 = vmatprep.subr.bf16.mxu0 %v1981_v40 }
  0xa4   :  { %1494 = vmatprep.subr.bf16.mxu1 %v1936_v29 }
  0xa6   :  { %1581 = vmatpush1.bf16.msra.mxu0 %v1979_v42 }
  0xa7   :  { %1495 = vmatpush1.bf16.msra.mxu1 %v1934_v30  ;;  %1582 = vmatprep.subr.bf16.mxu0 %v1987_v44  ;;  %v1988_v30 = vld [vmem:[#allocation7 + $0x100] ss:$8 sps:$4 sm:$0xff]  }
  0xa8   :  { %1496 = vmatprep.subr.bf16.mxu1 %v1939_v31  ;;  %v157_v31 = vrot.slane %v2322_v11, %v156_v24 }
  0xaa   :  { %1583 = vmatpush1.bf16.msra.mxu0 %v1985_v46  ;;  %v2000_v46 = vld [vmem:[#allocation7 + $0x120] ss:$8 sps:$4 sm:$0xff]  }
  0xab   :  { %1497 = vmatpush1.bf16.msra.mxu1 %v1937_v32  ;;  %1584 = vmatprep.subr.bf16.mxu0 %v1993_v48  ;;  %v1996_v32 = vld [vmem:[#allocation7 + $0x114] ss:$8 sps:$4 sm:$0xff]  }
  0xac   :  { %1498 = vmatprep.subr.bf16.mxu1 %v1942_v33  ;;  %v161_v33 = vrot.slane %v2322_v11, %v160_v26  ;;  %v2008_v48 = vld [vmem:[#allocation7 + $0x134] ss:$8 sps:$4 sm:$0xff]  }
  0xae   :  { %1585 = vmatpush1.bf16.msra.mxu0 %v1991_v49 }
  0xaf   :  { %1499 = vmatpush1.bf16.msra.mxu1 %v1940_v34  ;;  %1586 = vmatprep.subr.bf16.mxu0 %v1999_v53  ;;  %v2012_v53 = vld [vmem:[#allocation7 + $0x140] ss:$8 sps:$4 sm:$0xff]  }
  0xb0   :  { %1500 = vmatprep.subr.bf16.mxu1 %v1948_v35  ;;  %v1994_v35 = vld [vmem:[#allocation7 + $0x110] ss:$8 sps:$4 sm:$0xff]  }
  0xb2   :  { %1587 = vmatpush1.bf16.msra.mxu0 %v1997_v52  ;;  %v2014_v52 = vld [vmem:[#allocation7 + $0x144] ss:$8 sps:$4 sm:$0xff]  }
  0xb3   :  { %1501 = vmatpush1.bf16.msra.mxu1 %v1946_v36  ;;  %1588 = vmatprep.subr.bf16.mxu0 %v2005_v57  ;;  %v2018_v57 = vld [vmem:[#allocation7 + $0x150] ss:$8 sps:$4 sm:$0xff]  }
  0xb4   :  { %1502 = vmatprep.subr.bf16.mxu1 %v1954_v37 }
  0xb6   :  { %1589 = vmatpush1.bf16.msra.mxu0 %v2003_v56  ;;  %v168_v56 = vsub.s32 5, %v2317_v9 }
  0xb7   :  { %1503 = vmatpush1.bf16.msra.mxu1 %v1952_v38  ;;  %1590 = vmatprep.subr.bf16.mxu0 %v2011_v60  ;;  %v2002_v38 = vld [vmem:[#allocation7 + $0x124] ss:$8 sps:$4 sm:$0xff]  }
  0xb8   :  { %1504 = vmatprep.subr.bf16.mxu1 %v1960_v39  ;;  %v169_v60 = vrot.slane %v2322_v11, %v168_v56  ;;  %v2068_v56 = vld [vmem:[#allocation7 + $0x1d4] ss:$8 sps:$4 sm:$0xff]  }
  0xba   :  { %1591 = vmatpush1.bf16.msra.mxu0 %v2009_v59  ;;  %v2026_v59 = vld [vmem:[#allocation7 + $0x164] ss:$8 sps:$4 sm:$0xff]  }
  0xbb   :  { %1505 = vmatpush1.bf16.msra.mxu1 %v1958_v41  ;;  %1592 = vmatprep.subr.bf16.mxu0 %v2017_v62  ;;  %v2024_v62 = vld [vmem:[#allocation7 + $0x160] ss:$8 sps:$4 sm:$0xff]  }
  0xbc   :  { %1506 = vmatprep.subr.bf16.mxu1 %v1966_v43 }
  0xbe   :  { %1593 = vmatpush1.bf16.msra.mxu0 %v2015_v61 }
  0xbf   :  { %1507 = vmatpush1.bf16.msra.mxu1 %v1964_v45  ;;  %1594 = vmatprep.subr.bf16.mxu0 %v2023_v1 }
  0xc0   :  { %1508 = vmatprep.subr.bf16.mxu1 %v1972_v47 }
  0xc2   :  { %1595 = vmatpush1.bf16.msra.mxu0 %v2021_v63 }
  0xc3   :  { %1509 = vmatpush1.bf16.msra.mxu1 %v1970_v0  ;;  %1596 = vmatprep.subr.bf16.mxu0 %v2029_v3  ;;  %v2032_v3 = vld [vmem:[#allocation7 + $0x174] ss:$8 sps:$4 sm:$0xff]  }
  0xc4   :  { %1510 = vmatprep.subr.bf16.mxu1 %v1978_v50 }
  0xc6   :  { %1597 = vmatpush1.bf16.msra.mxu0 %v2027_v4 }
  0xc7   :  { %1511 = vmatpush1.bf16.msra.mxu1 %v1976_v51  ;;  %1598 = vmatprep.subr.bf16.mxu0 %v2035_v5  ;;  %v2006_v51 = vld [vmem:[#allocation7 + $0x130] ss:$8 sps:$4 sm:$0xff]  }
  0xc8   :  { %1512 = vmatprep.subr.bf16.mxu1 %v1984_v54  ;;  %v2020_v54 = vld [vmem:[#allocation7 + $0x154] ss:$8 sps:$4 sm:$0xff]  }
  0xca   :  { %1599 = vmatpush1.bf16.msra.mxu0 %v2033_v6 }
  0xcb   :  { %1513 = vmatpush1.bf16.msra.mxu1 %v1982_v55  ;;  %1611 = vmatprep.subr.bf16.mxu0 %v2041_v7  ;;  %v164_v55 = vsub.s32 4, %v2317_v9 }
  0xcc   :  { %1525 = vmatprep.subr.bf16.mxu1 %v1990_v58 }
  0xcd   :  { %v165_v58 = vrot.slane %v2322_v11, %v164_v55  ;;  %v2063_v55 = vld [vmem:[#allocation7 + $0x340] ss:$8 sps:$4 sm:$0xff]  }
 0x140   :  { %v540_v15 = vpop.f32.mrb[0].mxu0  ;;  %v583_v34 = vpop.f32.mrb[0].mxu1 }
 0x141   :  { %v541_v16 = vadd.f32 %v540_v15, %v149_v13  ;;  %v542_v17 = vpop.f32.mrb[1].mxu0  ;;  %v584_v36 = vadd.f32 %v583_v34, %v157_v31  ;;  %v585_v37 = vpop.f32.mrb[1].mxu1  ;;  %v2050_v34 = vld [vmem:[#allocation7 + $0x1a4] ss:$8 sps:$4 sm:$0xff]  }
 0x142   :  { %v543_v18 = vadd.f32 %v542_v17, %v153_v14  ;;  %v544_v19 = vpop.f32.mrb[2].mxu0  ;;  %v586_v39 = vadd.f32 %v585_v37, %v161_v33  ;;  %v587_v40 = vpop.f32.mrb[2].mxu1  ;;  %v2038_v17 = vld [vmem:[#allocation7 + $0x184] ss:$8 sps:$4 sm:$0xff]  }
 0x143   :  { %v678_v20 = vmax.f32 %v541_v16, 0.0  ;;  %v545_v21 = vadd.f32 %v544_v19, %v149_v13  ;;  %v546_v22 = vpop.f32.mrb[3].mxu0  ;;  %v680_v41 = vmax.f32 %v584_v36, 0.0  ;;  %v588_v42 = vadd.f32 %v587_v40, %v157_v31  ;;  %v589_v43 = vpop.f32.mrb[3].mxu1  ;;  %v2030_v13 = vld [vmem:[#allocation7 + $0x170] ss:$8 sps:$4 sm:$0xff]  }
 0x144   :  { %v547_v23 = vadd.f32 %v546_v22, %v153_v14  ;;  %v679_v2 = vmax.f32 %v543_v18, 0.0  ;;  %v681_v44 = vmax.f32 %v586_v39, 0.0  ;;  %v590_v45 = vadd.f32 %v589_v43, %v161_v33  ;;  %v2045_v31 = vld [vmem:[#allocation7 + $0x310] ss:$8 sps:$4 sm:$0xff]   ;;  %v2051_v43 = vld [vmem:[#allocation7 + $0x320] ss:$8 sps:$4 sm:$0xff]  }
 0x145   :  { %v686_v25 = vmax.f32 %v545_v21, 0.0  ;;  %v688_v47 = vmax.f32 %v588_v42, 0.0  ;;  %v172_v14 = vsub.s32 6, %v2317_v9  ;;  %v176_v18 = vsub.s32 7, %v2317_v9  ;;  %v2048_v42 = vld [vmem:[#allocation7 + $0x1a0] ss:$8 sps:$4 sm:$0xff]  }
 0x146   :  { %v687_v27 = vmax.f32 %v547_v23, 0.0  ;;  %v689_v0 = vmax.f32 %v590_v45, 0.0  ;;  %v2036_v23 = vld [vmem:[#allocation7 + $0x180] ss:$8 sps:$4 sm:$0xff]   ;;  %v2056_v45 = vld [vmem:[#allocation7 + $0x1b4] ss:$8 sps:$4 sm:$0xff]  }
 0x147   :  { %v694_v28 = vpack.c.bf16 %v686_v25, %v678_v20  ;;  %v2336_v49 = vpack.c.bf16 %v688_v47, %v680_v41  ;;  %v2039_v25 = vld [vmem:[#allocation7 + $0x300] ss:$8 sps:$4 sm:$0xff]   ;;  %v173_v26 = vrot.slane %v2322_v11, %v172_v14  ;;  %v2092_v14 = vld [vmem:[#allocation7 + $0x3a4] ss:$8 sps:$4 sm:$0xff]  }
 0x148   :  { %v695_v29 = vpack.c.bf16 %v687_v27, %v679_v2  ;;  %v697_v50 = vpack.c.bf16 %v689_v0, %v681_v44  ;;  %v2044_v2 = vld [vmem:[#allocation7 + $0x194] ss:$8 sps:$4 sm:$0xff]  }
 0x149   :  { %v2047_v27 = vld [vmem:[#allocation7 + $0x314] ss:$8 sps:$4 sm:$0xff]  }
 0x14a   :  { %1514 = vmatprep.mubr.bf16.mxu1 %v695_v29 }
 0x14b   :  { %1515 = vmatmul.mubr.bf16.vlgmr.msra.gmra.mrb[8].mxu1 %v694_v28  ;;  %v177_v28 = vrot.slane %v2322_v11, %v176_v18  ;;  %v2098_v18 = vld [vmem:[#allocation7 + $0x3c4] ss:$8 sps:$4 sm:$0xff]  }
 0x14c   :  { %1526 = vmatpush1.bf16.msra.mxu1 %v1988_v30  ;;  %1557 = vmatprep.mubr.bf16.mxu1 %v697_v50  ;;  %v2042_v30 = vld [vmem:[#allocation7 + $0x190] ss:$8 sps:$4 sm:$0xff]  }
 0x14d   :  { %1527 = vmatprep.subr.bf16.mxu1 %v1996_v32  ;;  %v2054_v50 = vld [vmem:[#allocation7 + $0x1b0] ss:$8 sps:$4 sm:$0xff]  }
 0x150   :  { %1528 = vmatpush1.bf16.msra.mxu1 %v1994_v35  ;;  %v2053_v35 = vld [vmem:[#allocation7 + $0x324] ss:$8 sps:$4 sm:$0xff]  }
 0x151   :  { %1529 = vmatprep.subr.bf16.mxu1 %v2002_v38 }
 0x154   :  { %1530 = vmatpush1.bf16.msra.mxu1 %v2000_v46  ;;  %v2059_v46 = vld [vmem:[#allocation7 + $0x334] ss:$8 sps:$4 sm:$0xff]  }
 0x155   :  { %1531 = vmatprep.subr.bf16.mxu1 %v2008_v48 }
 0x158   :  { %1532 = vmatpush1.bf16.msra.mxu1 %v2006_v51  ;;  %v2057_v51 = vld [vmem:[#allocation7 + $0x330] ss:$8 sps:$4 sm:$0xff]  }
 0x159   :  { %1533 = vmatprep.subr.bf16.mxu1 %v2014_v52  ;;  %v2062_v52 = vld [vmem:[#allocation7 + $0x1c4] ss:$8 sps:$4 sm:$0xff]  }
 0x15c   :  { %1534 = vmatpush1.bf16.msra.mxu1 %v2012_v53  ;;  %v2065_v53 = vld [vmem:[#allocation7 + $0x344] ss:$8 sps:$4 sm:$0xff]  }
 0x15d   :  { %1535 = vmatprep.subr.bf16.mxu1 %v2020_v54  ;;  %v2060_v54 = vld [vmem:[#allocation7 + $0x1c0] ss:$8 sps:$4 sm:$0xff]  }
 0x160   :  { %1536 = vmatpush1.bf16.msra.mxu1 %v2018_v57  ;;  %v626_v61 = vpop.f32.mrb[4].mxu0  ;;  %v2071_v57 = vld [vmem:[#allocation7 + $0x354] ss:$8 sps:$4 sm:$0xff]  }
 0x161   :  { %v627_v63 = vadd.f32 %v626_v61, %v165_v58  ;;  %v628_v1 = vpop.f32.mrb[5].mxu0  ;;  %1537 = vmatprep.subr.bf16.mxu1 %v2026_v59  ;;  %v669_v29 = vpop.f32.mrb[4].mxu1  ;;  %v2069_v59 = vld [vmem:[#allocation7 + $0x350] ss:$8 sps:$4 sm:$0xff]   ;;  %v2077_v61 = vld [vmem:[#allocation7 + $0x364] ss:$8 sps:$4 sm:$0xff]  }
 0x162   :  { %v629_v4 = vadd.f32 %v628_v1, %v169_v60  ;;  %v630_v5 = vpop.f32.mrb[6].mxu0  ;;  %v670_v32 = vadd.f32 %v669_v29, %v173_v26  ;;  %v671_v33 = vpop.f32.mrb[5].mxu1  ;;  %v2080_v1 = vld [vmem:[#allocation7 + $0x1f4] ss:$8 sps:$4 sm:$0xff]   ;;  %v1658_v29 = vld [vmem:[%s2375_s5] sm:$0x3] }
 0x163   :  { %v631_v6 = vadd.f32 %v630_v5, %v165_v58  ;;  %v632_v7 = vpop.f32.mrb[7].mxu0  ;;  %v682_v15 = vmax.f32 %v627_v63, 0.0  ;;  %v672_v36 = vadd.f32 %v671_v33, %v177_v28  ;;  %v673_v37 = vpop.f32.mrb[6].mxu1  ;;  %v2066_v58 = vld [vmem:[#allocation7 + $0x1d0] ss:$8 sps:$4 sm:$0xff]  }
 0x164   :  { %v633_v8 = vadd.f32 %v632_v7, %v169_v60  ;;  %1538 = vmatpush1.bf16.msra.mxu1 %v2024_v62  ;;  %v683_v19 = vmax.f32 %v629_v4, 0.0  ;;  %v684_v38 = vmax.f32 %v670_v32, 0.0  ;;  %v674_v39 = vadd.f32 %v673_v37, %v173_v26  ;;  %v675_v40 = vpop.f32.mrb[7].mxu1  ;;  %v2074_v60 = vld [vmem:[#allocation7 + $0x1e4] ss:$8 sps:$4 sm:$0xff]  }
 0x165   :  { %v690_v16 = vmax.f32 %v631_v6, 0.0  ;;  %1539 = vmatprep.subr.bf16.mxu1 %v2032_v3  ;;  %v685_v41 = vmax.f32 %v672_v36, 0.0  ;;  %v676_v11 = vadd.f32 %v675_v40, %v177_v28  ;;  %v2072_v62 = vld [vmem:[#allocation7 + $0x1e0] ss:$8 sps:$4 sm:$0xff]   ;;  %v2083_v3 = vld [vmem:[#allocation7 + $0x374] ss:$8 sps:$4 sm:$0xff]  }
 0x166   :  { %v691_v20 = vmax.f32 %v633_v8, 0.0  ;;  %v692_v44 = vmax.f32 %v674_v39, 0.0  ;;  %v2075_v63 = vld [vmem:[#allocation7 + $0x360] ss:$8 sps:$4 sm:$0xff]   ;;  %v2078_v4 = vld [vmem:[#allocation7 + $0x1f0] ss:$8 sps:$4 sm:$0xff]  }
 0x167   :  { %v698_v21 = vpack.c.bf16 %v690_v16, %v682_v15  ;;  %v693_v47 = vmax.f32 %v676_v11, 0.0  ;;  %v2081_v5 = vld [vmem:[#allocation7 + $0x370] ss:$8 sps:$4 sm:$0xff]   ;;  %v2086_v6 = vld [vmem:[#allocation7 + $0x384] ss:$8 sps:$4 sm:$0xff]  }
 0x168   :  { %v699_v22 = vpack.c.bf16 %v691_v20, %v683_v19  ;;  %1540 = vmatpush1.bf16.msra.mxu1 %v2030_v13  ;;  %v2346_v48 = vpack.c.bf16 %v692_v44, %v684_v38  ;;  %v2084_v7 = vld [vmem:[#allocation7 + $0x380] ss:$8 sps:$4 sm:$0xff]   ;;  %v2089_v8 = vld [vmem:[#allocation7 + $0x394] ss:$8 sps:$4 sm:$0xff]   ;;  %v2087_v13 = vld [vmem:[#allocation7 + $0x390] ss:$8 sps:$4 sm:$0xff]  }
 0x169   :  { %1541 = vmatprep.subr.bf16.mxu1 %v2038_v17  ;;  %v701_v0 = vpack.c.bf16 %v693_v47, %v685_v41  ;;  %v2090_v15 = vld [vmem:[#allocation7 + $0x3a0] ss:$8 sps:$4 sm:$0xff]   ;;  %v2095_v16 = vld [vmem:[#allocation7 + $0x3b4] ss:$8 sps:$4 sm:$0xff]   ;;  %v2093_v17 = vld [vmem:[#allocation7 + $0x3b0] ss:$8 sps:$4 sm:$0xff]  }
 0x16a   :  { %1600 = vmatprep.mubr.bf16.mxu0 %v699_v22  ;;  %v2096_v19 = vld [vmem:[#allocation7 + $0x3c0] ss:$8 sps:$4 sm:$0xff]   ;;  %v2101_v20 = vld [vmem:[#allocation7 + $0x3d4] ss:$8 sps:$4 sm:$0xff]  }
 0x16b   :  { %1601 = vmatmul.mubr.bf16.vlgmr.msra.gmra.mrb[8].mxu0 %v698_v21  ;;  %v2099_v21 = vld [vmem:[#allocation7 + $0x3d0] ss:$8 sps:$4 sm:$0xff]   ;;  %v2102_v22 = vld [vmem:[#allocation7 + $0x3e0] ss:$8 sps:$4 sm:$0xff]  }
 0x16c   :  { %1542 = vmatpush1.bf16.msra.mxu1 %v2036_v23  ;;  %1612 = vmatpush1.bf16.msra.mxu0 %v2039_v25  ;;  %v2107_v23 = vld [vmem:[#allocation7 + $0x3f4] ss:$8 sps:$4 sm:$0xff]   ;;  %v2105_v25 = vld [vmem:[#allocation7 + $0x3f0] ss:$8 sps:$4 sm:$0xff]  }
 0x16d   :  { %1543 = vmatprep.subr.bf16.mxu1 %v2044_v2  ;;  %1613 = vmatprep.subr.bf16.mxu0 %v2047_v27 }
 0x16e   :  { %1643 = vmatprep.mubr.bf16.mxu0 %v701_v0 }
 0x170   :  { %1544 = vmatpush1.bf16.msra.mxu1 %v2042_v30  ;;  %1614 = vmatpush1.bf16.msra.mxu0 %v2045_v31  ;;  %v830_v30 = vld [vmem:[%s2374_s4] sm:$0x3]  ;;  %v1659_v31 = vunpack.c.l.bf16 %v1658_v29 }
 0x171   :  { %1545 = vmatprep.subr.bf16.mxu1 %v2050_v34  ;;  %1615 = vmatprep.subr.bf16.mxu0 %v2053_v35  ;;  %v835_v32 = vrot.slane %v830_v30, %v2320_v10  ;;  %v839_v33 = vrot.slane %v830_v30, %v152_v12 }
 0x172   :  { %v1664_v34 = vrot.slane %v1659_v31, %v2320_v10  ;;  %v1668_v35 = vrot.slane %v1659_v31, %v156_v24 }
 0x174   :  { %1546 = vmatpush1.bf16.msra.mxu1 %v2048_v42  ;;  %1616 = vmatpush1.bf16.msra.mxu0 %v2051_v43  ;;  %v1674_v11 = vrot.slane %v1664_v34, %v2320_v10 }
 0x175   :  { %1547 = vmatprep.subr.bf16.mxu1 %v2056_v45  ;;  %1617 = vmatprep.subr.bf16.mxu0 %v2059_v46  ;;  %v1678_v45 = vrot.slane %v1668_v35, %v2320_v10 }
 0x178   :  { %1548 = vmatpush1.bf16.msra.mxu1 %v2054_v50  ;;  %1618 = vmatpush1.bf16.msra.mxu0 %v2057_v51 }
 0x179   :  { %1549 = vmatprep.subr.bf16.mxu1 %v2062_v52  ;;  %1619 = vmatprep.subr.bf16.mxu0 %v2065_v53 }
 0x17c   :  { %1550 = vmatpush1.bf16.msra.mxu1 %v2060_v54  ;;  %1620 = vmatpush1.bf16.msra.mxu0 %v2063_v55 }
 0x17d   :  { %1551 = vmatprep.subr.bf16.mxu1 %v2068_v56  ;;  %1621 = vmatprep.subr.bf16.mxu0 %v2071_v57 }
 0x180   :  { %1552 = vmatpush1.bf16.msra.mxu1 %v2066_v58  ;;  %1622 = vmatpush1.bf16.msra.mxu0 %v2069_v59 }
 0x181   :  { %1553 = vmatprep.subr.bf16.mxu1 %v2074_v60  ;;  %1623 = vmatprep.subr.bf16.mxu0 %v2077_v61 }
 0x184   :  { %1554 = vmatpush1.bf16.msra.mxu1 %v2072_v62  ;;  %1624 = vmatpush1.bf16.msra.mxu0 %v2075_v63 }
 0x185   :  { %1555 = vmatprep.subr.bf16.mxu1 %v2080_v1  ;;  %1625 = vmatprep.subr.bf16.mxu0 %v2083_v3 }
 0x188   :  { %1556 = vmatpush1.bf16.msra.mxu1 %v2078_v4  ;;  %1626 = vmatpush1.bf16.msra.mxu0 %v2081_v5 }
 0x189   :  { %1627 = vmatprep.subr.bf16.mxu0 %v2086_v6 }
 0x18b   :  { %1558 = vmatmul.mubr.bf16.vlgmr.msra.gmra.mrb[8].mxu1 %v2336_v49  ;;  %v2104_v49 = vld [vmem:[#allocation7 + $0x3e4] ss:$8 sps:$4 sm:$0xff]  }
 0x18c   :  { %1628 = vmatpush1.bf16.msra.mxu0 %v2084_v7 }
 0x18d   :  { %1629 = vmatprep.subr.bf16.mxu0 %v2089_v8 }
 0x190   :  { %1630 = vmatpush1.bf16.msra.mxu0 %v2087_v13 }
 0x191   :  { %1631 = vmatprep.subr.bf16.mxu0 %v2092_v14 }
 0x194   :  { %1632 = vmatpush1.bf16.msra.mxu0 %v2090_v15 }
 0x195   :  { %1633 = vmatprep.subr.bf16.mxu0 %v2095_v16 }
 0x198   :  { %1634 = vmatpush1.bf16.msra.mxu0 %v2093_v17 }
 0x199   :  { %1635 = vmatprep.subr.bf16.mxu0 %v2098_v18 }
 0x19c   :  { %1636 = vmatpush1.bf16.msra.mxu0 %v2096_v19 }
 0x19d   :  { %1637 = vmatprep.subr.bf16.mxu0 %v2101_v20 }
 0x1a0   :  { %1638 = vmatpush1.bf16.msra.mxu0 %v2099_v21 }
 0x1a1   :  { %1639 = vmatprep.subr.bf16.mxu0 %v2104_v49 }
 0x1a4   :  { %1640 = vmatpush1.bf16.msra.mxu0 %v2102_v22 }
 0x1a5   :  { %1641 = vmatprep.subr.bf16.mxu0 %v2107_v23 }
 0x1a8   :  { %1642 = vmatpush1.bf16.msra.mxu0 %v2105_v25 }
 0x1ab   :  { %1644 = vmatmul.mubr.bf16.vlgmr.msra.gmra.mrb[8].mxu0 %v2346_v48 }
 0x25e   :  { %v1559_v26 = vpop.f32.mrb[8].mxu1 }
 0x25f   :  { %v1561_v2 = vpop.f32.mrb[9].mxu1  ;;  %v1891_v36 = vadd.f32 %v1559_v26, %v835_v32 }
 0x260   :  { %v1563_v27 = vpop.f32.mrb[10].mxu1  ;;  %v1893_v37 = vadd.f32 %v1561_v2, %v839_v33 }
 0x261   :  { %v1565_v28 = vpop.f32.mrb[11].mxu1  ;;  %v1895_v39 = vadd.f32 %v1563_v27, %v835_v32 }
 0x262   :  { %v1897_v42 = vadd.f32 %v1565_v28, %v839_v33 }
 0x27e   :  { %v1645_v38 = vpop.f32.mrb[8].mxu0 }
 0x27f   :  { %v1892_v40 = vadd.f32 %v1891_v36, %v1645_v38  ;;  %v1647_v41 = vpop.f32.mrb[9].mxu0 }
 0x280   :  { %v1894_v43 = vadd.f32 %v1893_v37, %v1647_v41  ;;  %v1649_v44 = vpop.f32.mrb[10].mxu0 }
 0x281   :  { %v1654_v46 = vmax.f32 %v1892_v40, 0.0  ;;  %v1896_v12 = vadd.f32 %v1895_v39, %v1649_v44  ;;  %v1651_v47 = vpop.f32.mrb[11].mxu0 }
 0x282   :  { %v1655_v48 = vmax.f32 %v1894_v43, 0.0  ;;  %v1898_v0 = vadd.f32 %v1897_v42, %v1651_v47 }
 0x283   :  { %v1656_v9 = vmax.f32 %v1896_v12, 0.0  ;;  %v1679_v24 = vmul.f32 %v1674_v11, %v1654_v46 }
 0x284   :  { %v1657_v50 = vmax.f32 %v1898_v0, 0.0  ;;  %v1680_v51 = vmul.f32 %v1678_v45, %v1655_v48 }
 0x285   :  { %v1681_v52 = vmul.f32 %v1674_v11, %v1656_v9 }
 0x286   :  { %v1682_v53 = vmul.f32 %v1678_v45, %v1657_v50  ;;  %v1683_v54 = vadd.f32 %v1680_v51, %v1679_v24 }
 0x288   :  { %1684 = vadd.xlane.f32.xlu0 %v1683_v54  ;;  %v1686_v55 = vadd.f32 %v1682_v53, %v1681_v52 }
 0x28c   :  { %1687 = vadd.xlane.f32.xlu0 %v1686_v55 }
 0x315   :  { %v1685_v56 = vpop.xlane.xlu0 %1684 }
 0x316   :  { %1690 = vst.msk [vmem:[%s2376_s6] sm:$0xff] %vm1689_vm0, %v1685_v56 }
 0x319   :  { %v1688_v10 = vpop.xlane.xlu0 %1687 }
 0x31a   :  { %1691 = vst.msk [vmem:[%s2376_s6 + $0x8] sm:$0xff] %vm1689_vm0, %v1688_v10 }
 0x31b   :  { %1696 = vsyncpa [#allocation3], 1 }
 0x31c   :  { %1697 = vsyncpa [#allocation5], 1 }
 0x31d   :  { %1698 = vsyncpa [#allocation8], 1 }

</bundles_post_ra>
